<compile_context>
chip_gen: v5e
topology: v5e:2x2
jax: 0.10.0
libtpu: 0.0.40
codegen_flags: <defaults>
</compile_context>

<pallas_src>
import functools

import jax
import jax.numpy as jnp
from jax import lax
from jax.experimental import pallas as pl
from jax.experimental.pallas import tpu as pltpu


def _cnn_residual_kernel(
    x_ref,      # (1, L, INC)      f32   one batch element, length-major
    xr_ref,     # (1, 1, XR)       f32   residual features for this batch element
    w1_ref,     # (K*INC, C1)      bf16  conv1 weight, (k*INC + ci, co) layout
    b1_ref,     # (1, C1)          f32
    w2_ref,     # (K*C1, C2)       bf16  conv2 weight, (k*C1 + ci, co) layout
    b2_ref,     # (1, C2)          f32
    wfa_ref,    # (C1, FC1)        bf16  W_fc1 rows multiplying x1
    wfb_ref,    # (C2, FC1)        bf16  W_fc1 rows multiplying x2
    wfc_ref,    # (XR, FC1)        bf16  W_fc1 rows multiplying xr
    bf1_ref,    # (1, FC1)         f32
    wf2_ref,    # (FC1, OUT_PAD)   bf16  final Linear, zero-padded to 128 lanes
    bf2_ref,    # (1, OUT_PAD)     f32
    out_ref,    # (1, 1, OUT_PAD)  f32
    *, K, pad):
  """One batch element per grid step; weights stay VMEM-resident (constant index maps)."""

  def im2col(a):
    # a: (L, C) -> (L, K*C) with result[l, k*C + c] = a_zeropad[l + k, c].
    # Built in-register: XLU sublane rolls + iota row masks (no VMEM scratch).
    L = a.shape[0]
    rows = lax.broadcasted_iota(jnp.int32, (L, 1), 0)
    cols = []
    for k in range(K):                               # K is small; static unroll
      shift = (pad - k) % L
      rolled = pltpu.roll(a, shift=shift, axis=0) if shift else a
      src = rows + (k - pad)
      valid = jnp.logical_and(src >= 0, src < L)
      cols.append(jnp.where(valid, rolled, 0.0))
    return jnp.concatenate(cols, axis=-1)

  # ---- conv1 (k=5, s=1, p=2) + ReLU, as ONE im2col matmul. ----
  x = x_ref[0]                                              # (L, INC) f32
  p1 = im2col(x).astype(jnp.bfloat16)                       # (L, K*INC)
  h1 = jnp.maximum(
      jnp.dot(p1, w1_ref[...], preferred_element_type=jnp.float32) + b1_ref[...],
      0.0)                                                  # (L, C1) f32

  # adaptive_max_pool2d(conv1, (C1, 1)) == max over the length axis.
  x1 = jnp.max(h1, axis=0, keepdims=True)                   # (1, C1)

  # ---- conv2 + ReLU: all K taps fused into ONE 160-deep im2col matmul. ----
  p2 = im2col(h1).astype(jnp.bfloat16)                      # (L, K*C1)
  h2 = jnp.maximum(
      jnp.dot(p2, w2_ref[...], preferred_element_type=jnp.float32) + b2_ref[...],
      0.0)                                                  # (L, C2) f32
  x2 = jnp.max(h2, axis=0, keepdims=True)                   # (1, C2)

  # ---- FC head: cat((x1, x2, xr), 1) @ W_fc1 as a row-split sum; Dropout = identity. ----
  h = (jnp.dot(x1.astype(jnp.bfloat16), wfa_ref[...], preferred_element_type=jnp.float32)
       + jnp.dot(x2.astype(jnp.bfloat16), wfb_ref[...], preferred_element_type=jnp.float32)
       + jnp.dot(xr_ref[0].astype(jnp.bfloat16), wfc_ref[...],
                 preferred_element_type=jnp.float32)
       + bf1_ref[...])
  h = jnp.maximum(h, 0.0)                                   # (1, FC1)
  out_ref[0] = (jnp.dot(h.astype(jnp.bfloat16), wf2_ref[...],
                        preferred_element_type=jnp.float32) + bf2_ref[...])


def prepare_cnn_residual_params(params, *, weight_dtype=jnp.bfloat16):
  """One-time weight re-layout + cast, hoisted out of the per-call forward."""
  w1, b1, w2, b2, wf1, bf1, wf2, bf2 = params
  C1, INC, K = w1.shape
  C2 = w2.shape[0]
  FC1, OUT = wf2.shape
  out_pad = 128 * pl.cdiv(OUT, 128)
  w1_mat = jnp.transpose(w1, (2, 1, 0)).reshape(K * INC, C1).astype(weight_dtype)
  w2_mat = jnp.transpose(w2, (2, 1, 0)).reshape(K * C1, C2).astype(weight_dtype)
  wfa = wf1[:C1].astype(weight_dtype)
  wfb = wf1[C1:C1 + C2].astype(weight_dtype)
  wfc = wf1[C1 + C2:].astype(weight_dtype)
  wf2p = jnp.pad(wf2, ((0, 0), (0, out_pad - OUT))).astype(weight_dtype)
  bf2p = jnp.pad(bf2.reshape(1, OUT), ((0, 0), (0, out_pad - OUT))).astype(jnp.float32)
  return (w1_mat, b1.reshape(1, C1).astype(jnp.float32),
          w2_mat, b2.reshape(1, C2).astype(jnp.float32),
          wfa, wfb, wfc, bf1.reshape(1, FC1).astype(jnp.float32),
          wf2p, bf2p)


@functools.partial(jax.jit, static_argnames=("out_dim",))
def cnn_residual_forward_pallas(x, xr, prepped, *, out_dim):
  """CNN_residual.forward. x: (B, inc, L) f32, xr: (B, xr) f32 -> (B, out_dim) f32."""
  (w1_mat, b1r, w2_mat, b2r, wfa, wfb, wfc, bf1r, wf2p, bf2p) = prepped
  B, INC, L = x.shape
  KINC, C1 = w1_mat.shape
  K = KINC // INC
  C2 = w2_mat.shape[1]
  XR, FC1 = wfc.shape
  OUT_PAD = wf2p.shape[1]
  pad = (K - 1) // 2

  x_t = jnp.transpose(x, (0, 2, 1))          # (B, L, INC): length-major per batch element
  xr3 = xr.reshape(B, 1, XR)

  kernel = functools.partial(_cnn_residual_kernel, K=K, pad=pad)

  flops = 2 * B * (L * (K * INC * C1 + K * C1 * C2)
                   + (C1 + C2 + XR) * FC1 + FC1 * OUT_PAD)
  weight_bytes = sum(int(a.size) * a.dtype.itemsize for a in prepped)
  bytes_accessed = int(x_t.size * 4 + xr3.size * 4 + B * OUT_PAD * 4 + weight_bytes)

  y = pl.pallas_call(
      kernel,
      grid=(B,),
      out_shape=jax.ShapeDtypeStruct((B, 1, OUT_PAD), jnp.float32),
      in_specs=[
          pl.BlockSpec((1, L, INC), lambda b: (b, 0, 0)),     # x   (per-batch tile)
          pl.BlockSpec((1, 1, XR), lambda b: (b, 0, 0)),      # xr  (per-batch tile)
          pl.BlockSpec((K * INC, C1), lambda b: (0, 0)),      # w1  (resident)
          pl.BlockSpec((1, C1), lambda b: (0, 0)),            # b1
          pl.BlockSpec((K * C1, C2), lambda b: (0, 0)),       # w2
          pl.BlockSpec((1, C2), lambda b: (0, 0)),            # b2
          pl.BlockSpec((C1, FC1), lambda b: (0, 0)),          # wfa
          pl.BlockSpec((C2, FC1), lambda b: (0, 0)),          # wfb
          pl.BlockSpec((XR, FC1), lambda b: (0, 0)),          # wfc
          pl.BlockSpec((1, FC1), lambda b: (0, 0)),           # bf1
          pl.BlockSpec((FC1, OUT_PAD), lambda b: (0, 0)),     # wf2 (lane-padded)
          pl.BlockSpec((1, OUT_PAD), lambda b: (0, 0)),       # bf2
      ],
      out_specs=pl.BlockSpec((1, 1, OUT_PAD), lambda b: (b, 0, 0)),
      compiler_params=pltpu.CompilerParams(
          dimension_semantics=("parallel",),         # split batch across TCs on v7x
          vmem_limit_bytes=8 * 1024 * 1024),         # right-sized; fine on v7x 64 MiB
      cost_estimate=pl.CostEstimate(flops=flops, transcendentals=0,
                                    bytes_accessed=bytes_accessed),
  )(x_t, xr3, w1_mat, b1r, w2_mat, b2r, wfa, wfb, wfc, bf1r, wf2p, bf2p)

  return y[:, 0, :out_dim]


def cnn_residual_forward_ref(x, xr, params, *, weight_dtype=jnp.bfloat16):
  """Pure-XLA reference of the same forward (bf16 weights/inputs, f32 activations)."""
  w1, b1, w2, b2, wf1, bf1, wf2, bf2 = params
  c = lambda a: a.astype(weight_dtype).astype(jnp.float32)
  K = w1.shape[2]
  pad = (K - 1) // 2
  h = lax.conv_general_dilated(c(x), c(w1), window_strides=(1,),
                               padding=((pad, pad),),
                               dimension_numbers=("NCH", "OIH", "NCH"))
  h = jnp.maximum(h + b1[None, :, None], 0.0)
  x1 = jnp.max(h, axis=2)                       # adaptive max pool over length
  h2 = lax.conv_general_dilated(h, c(w2), window_strides=(1,),
                                padding=((pad, pad),),
                                dimension_numbers=("NCH", "OIH", "NCH"))
  h2 = jnp.maximum(h2 + b2[None, :, None], 0.0)
  x2 = jnp.max(h2, axis=2)
  feat = jnp.concatenate([x1, x2, c(xr)], axis=1)
  hh = jnp.maximum(feat @ c(wf1) + bf1, 0.0)
  return hh @ c(wf2) + bf2


if __name__ == "__main__":
  # Small shapes consistent with CNN_residual(inc=4, nb_filtres=[8], ker_size=[5,2],
  # srides=[1,2], xr_size=64, FC_L_size=[128], out=3) on a length-16 1-D signal.
  B, INC, L = 2, 4, 16
  NB = 8
  C1, C2 = INC * NB, INC * NB * NB             # 32, 256
  K, XR, FC1, OUT = 5, 64, 128, 3

  key = jax.random.PRNGKey(0)
  ks = jax.random.split(key, 10)
  x   = jax.random.normal(ks[0], (B, INC, L), jnp.float32)
  xr  = jax.random.normal(ks[1], (B, XR), jnp.float32)
  w1  = jax.random.normal(ks[2], (C1, INC, K), jnp.float32) * 0.10
  b1  = jax.random.normal(ks[3], (C1,), jnp.float32) * 0.10
  w2  = jax.random.normal(ks[4], (C2, C1, K), jnp.float32) * 0.05
  b2  = jax.random.normal(ks[5], (C2,), jnp.float32) * 0.05
  wf1 = jax.random.normal(ks[6], (C1 + C2 + XR, FC1), jnp.float32) * 0.05
  bf1 = jax.random.normal(ks[7], (FC1,), jnp.float32) * 0.05
  wf2 = jax.random.normal(ks[8], (FC1, OUT), jnp.float32) * 0.05
  bf2 = jax.random.normal(ks[9], (OUT,), jnp.float32) * 0.05
  params = (w1, b1, w2, b2, wf1, bf1, wf2, bf2)

  # One-time weight re-layout + bf16 cast (cached across forward calls).
  prepped = jax.tree_util.tree_map(jax.block_until_ready,
                                   prepare_cnn_residual_params(params))

  y = jax.block_until_ready(
      cnn_residual_forward_pallas(x, xr, prepped, out_dim=OUT))
  assert y.shape == (B, OUT), y.shape

  y_ref = cnn_residual_forward_ref(x, xr, params)
  assert jnp.allclose(y, y_ref, rtol=2e-2, atol=2e-2), (y, y_ref)
  print("KERNEL_OK")
</pallas_src>

<mosaic_0001>
module attributes {stable_mosaic.version = 11 : i64} {
  func.func @_cnn_residual_kernel(%arg0: i32, %arg1: memref<1x16x4xf32, #tpu.memory_space<vmem>>, %arg2: memref<1x1x64xf32, #tpu.memory_space<vmem>>, %arg3: memref<20x32xbf16, #tpu.memory_space<vmem>>, %arg4: memref<1x32xf32, #tpu.memory_space<vmem>>, %arg5: memref<160x256xbf16, #tpu.memory_space<vmem>>, %arg6: memref<1x256xf32, #tpu.memory_space<vmem>>, %arg7: memref<32x128xbf16, #tpu.memory_space<vmem>>, %arg8: memref<256x128xbf16, #tpu.memory_space<vmem>>, %arg9: memref<64x128xbf16, #tpu.memory_space<vmem>>, %arg10: memref<1x128xf32, #tpu.memory_space<vmem>>, %arg11: memref<128x128xbf16, #tpu.memory_space<vmem>>, %arg12: memref<1x128xf32, #tpu.memory_space<vmem>>, %arg13: memref<1x1x128xf32, #tpu.memory_space<vmem>>) attributes {dimension_semantics = [#tpu.dimension_semantics<parallel>], iteration_bounds = array<i64: 2>, scalar_prefetch = 0 : i64, scratch_operands = 0 : i64, tpu.core_type = #tpu.core_type<tc>, window_params = [{transform_indices = @transform_0, window_bounds = array<i64: 1, 16, 4>}, {transform_indices = @transform_1, window_bounds = array<i64: 1, 1, 64>}, {pipeline_mode = #tpu.pipeline_mode<synchronous>, transform_indices = @transform_2, window_bounds = array<i64: 20, 32>}, {pipeline_mode = #tpu.pipeline_mode<synchronous>, transform_indices = @transform_3, window_bounds = array<i64: 1, 32>}, {pipeline_mode = #tpu.pipeline_mode<synchronous>, transform_indices = @transform_4, window_bounds = array<i64: 160, 256>}, {pipeline_mode = #tpu.pipeline_mode<synchronous>, transform_indices = @transform_5, window_bounds = array<i64: 1, 256>}, {pipeline_mode = #tpu.pipeline_mode<synchronous>, transform_indices = @transform_6, window_bounds = array<i64: 32, 128>}, {pipeline_mode = #tpu.pipeline_mode<synchronous>, transform_indices = @transform_7, window_bounds = array<i64: 256, 128>}, {pipeline_mode = #tpu.pipeline_mode<synchronous>, transform_indices = @transform_8, window_bounds = array<i64: 64, 128>}, {pipeline_mode = #tpu.pipeline_mode<synchronous>, transform_indices = @transform_9, window_bounds = array<i64: 1, 128>}, {pipeline_mode = #tpu.pipeline_mode<synchronous>, transform_indices = @transform_10, window_bounds = array<i64: 128, 128>}, {pipeline_mode = #tpu.pipeline_mode<synchronous>, transform_indices = @transform_11, window_bounds = array<i64: 1, 128>}, {transform_indices = @transform_12, window_bounds = array<i64: 1, 1, 128>}]} {
    %c0 = arith.constant 0 : index
    %c0_0 = arith.constant 0 : index
    %c0_1 = arith.constant 0 : index
    %0 = vector.load %arg1[%c0, %c0_0, %c0_1] : memref<1x16x4xf32, #tpu.memory_space<vmem>>, vector<1x16x4xf32>
    %1 = vector.shape_cast %0 : vector<1x16x4xf32> to vector<16x4xf32>
    %2 = tpu.iota {dimensions = array<i32: 0>} : vector<16x1xi32>
    %c2_i32 = arith.constant 2 : i32
    %3 = tpu.dynamic_rotate %1 by %c2_i32 dim 0 : vector<16x4xf32>, i32 -> vector<16x4xf32>
    %c-2_i32 = arith.constant -2 : i32
    %4 = vector.broadcast %c-2_i32 : i32 to vector<16x1xi32>
    %5 = arith.addi %2, %4 : vector<16x1xi32>
    %c0_i32 = arith.constant 0 : i32
    %6 = vector.broadcast %c0_i32 : i32 to vector<16x1xi32>
    %7 = arith.cmpi sge, %5, %6 : vector<16x1xi32>
    %c16_i32 = arith.constant 16 : i32
    %8 = vector.broadcast %c16_i32 : i32 to vector<16x1xi32>
    %9 = arith.cmpi slt, %5, %8 : vector<16x1xi32>
    %10 = arith.andi %7, %9 : vector<16x1xi1>
    %cst = arith.constant 0.000000e+00 : f32
    %11 = vector.shape_cast %10 : vector<16x1xi1> to vector<16x1xi1>
    %12 = vector.broadcast %11 : vector<16x1xi1> to vector<16x4xi1>
    %13 = vector.broadcast %cst : f32 to vector<16x4xf32>
    %14 = arith.select %12, %3, %13 : vector<16x4xi1>, vector<16x4xf32>
    %c1_i32 = arith.constant 1 : i32
    %15 = tpu.dynamic_rotate %1 by %c1_i32 dim 0 : vector<16x4xf32>, i32 -> vector<16x4xf32>
    %c-1_i32 = arith.constant -1 : i32
    %16 = vector.broadcast %c-1_i32 : i32 to vector<16x1xi32>
    %17 = arith.addi %2, %16 : vector<16x1xi32>
    %c0_i32_2 = arith.constant 0 : i32
    %18 = vector.broadcast %c0_i32_2 : i32 to vector<16x1xi32>
    %19 = arith.cmpi sge, %17, %18 : vector<16x1xi32>
    %c16_i32_3 = arith.constant 16 : i32
    %20 = vector.broadcast %c16_i32_3 : i32 to vector<16x1xi32>
    %21 = arith.cmpi slt, %17, %20 : vector<16x1xi32>
    %22 = arith.andi %19, %21 : vector<16x1xi1>
    %cst_4 = arith.constant 0.000000e+00 : f32
    %23 = vector.shape_cast %22 : vector<16x1xi1> to vector<16x1xi1>
    %24 = vector.broadcast %23 : vector<16x1xi1> to vector<16x4xi1>
    %25 = vector.broadcast %cst_4 : f32 to vector<16x4xf32>
    %26 = arith.select %24, %15, %25 : vector<16x4xi1>, vector<16x4xf32>
    %c0_i32_5 = arith.constant 0 : i32
    %27 = vector.broadcast %c0_i32_5 : i32 to vector<16x1xi32>
    %28 = arith.addi %2, %27 : vector<16x1xi32>
    %c0_i32_6 = arith.constant 0 : i32
    %29 = vector.broadcast %c0_i32_6 : i32 to vector<16x1xi32>
    %30 = arith.cmpi sge, %28, %29 : vector<16x1xi32>
    %c16_i32_7 = arith.constant 16 : i32
    %31 = vector.broadcast %c16_i32_7 : i32 to vector<16x1xi32>
    %32 = arith.cmpi slt, %28, %31 : vector<16x1xi32>
    %33 = arith.andi %30, %32 : vector<16x1xi1>
    %cst_8 = arith.constant 0.000000e+00 : f32
    %34 = vector.shape_cast %33 : vector<16x1xi1> to vector<16x1xi1>
    %35 = vector.broadcast %34 : vector<16x1xi1> to vector<16x4xi1>
    %36 = vector.broadcast %cst_8 : f32 to vector<16x4xf32>
    %37 = arith.select %35, %1, %36 : vector<16x4xi1>, vector<16x4xf32>
    %c15_i32 = arith.constant 15 : i32
    %38 = tpu.dynamic_rotate %1 by %c15_i32 dim 0 : vector<16x4xf32>, i32 -> vector<16x4xf32>
    %c1_i32_9 = arith.constant 1 : i32
    %39 = vector.broadcast %c1_i32_9 : i32 to vector<16x1xi32>
    %40 = arith.addi %2, %39 : vector<16x1xi32>
    %c0_i32_10 = arith.constant 0 : i32
    %41 = vector.broadcast %c0_i32_10 : i32 to vector<16x1xi32>
    %42 = arith.cmpi sge, %40, %41 : vector<16x1xi32>
    %c16_i32_11 = arith.constant 16 : i32
    %43 = vector.broadcast %c16_i32_11 : i32 to vector<16x1xi32>
    %44 = arith.cmpi slt, %40, %43 : vector<16x1xi32>
    %45 = arith.andi %42, %44 : vector<16x1xi1>
    %cst_12 = arith.constant 0.000000e+00 : f32
    %46 = vector.shape_cast %45 : vector<16x1xi1> to vector<16x1xi1>
    %47 = vector.broadcast %46 : vector<16x1xi1> to vector<16x4xi1>
    %48 = vector.broadcast %cst_12 : f32 to vector<16x4xf32>
    %49 = arith.select %47, %38, %48 : vector<16x4xi1>, vector<16x4xf32>
    %c14_i32 = arith.constant 14 : i32
    %50 = tpu.dynamic_rotate %1 by %c14_i32 dim 0 : vector<16x4xf32>, i32 -> vector<16x4xf32>
    %c2_i32_13 = arith.constant 2 : i32
    %51 = vector.broadcast %c2_i32_13 : i32 to vector<16x1xi32>
    %52 = arith.addi %2, %51 : vector<16x1xi32>
    %c0_i32_14 = arith.constant 0 : i32
    %53 = vector.broadcast %c0_i32_14 : i32 to vector<16x1xi32>
    %54 = arith.cmpi sge, %52, %53 : vector<16x1xi32>
    %c16_i32_15 = arith.constant 16 : i32
    %55 = vector.broadcast %c16_i32_15 : i32 to vector<16x1xi32>
    %56 = arith.cmpi slt, %52, %55 : vector<16x1xi32>
    %57 = arith.andi %54, %56 : vector<16x1xi1>
    %cst_16 = arith.constant 0.000000e+00 : f32
    %58 = vector.shape_cast %57 : vector<16x1xi1> to vector<16x1xi1>
    %59 = vector.broadcast %58 : vector<16x1xi1> to vector<16x4xi1>
    %60 = vector.broadcast %cst_16 : f32 to vector<16x4xf32>
    %61 = arith.select %59, %50, %60 : vector<16x4xi1>, vector<16x4xf32>
    %62 = tpu.concatenate %14, %26, %37, %49, %61 in 1 : vector<16x4xf32>, vector<16x4xf32>, vector<16x4xf32>, vector<16x4xf32>, vector<16x4xf32> -> vector<16x20xf32>
    %63 = arith.truncf %62 : vector<16x20xf32> to vector<16x20xbf16>
    %c0_17 = arith.constant 0 : index
    %c0_18 = arith.constant 0 : index
    %64 = vector.load %arg3[%c0_17, %c0_18] : memref<20x32xbf16, #tpu.memory_space<vmem>>, vector<20x32xbf16>
    %cst_19 = arith.constant dense<0.000000e+00> : vector<16x32xf32>
    %65 = tpu.matmul %63, %64, %cst_19 {dimension_numbers = #tpu.dot_dimension_numbers<[1], [0], [0], [1], [0, 0, 1, 1], [], []>} : vector<16x20xbf16>, vector<20x32xbf16>, vector<16x32xf32> -> vector<16x32xf32>
    %c0_20 = arith.constant 0 : index
    %c0_21 = arith.constant 0 : index
    %66 = vector.load %arg4[%c0_20, %c0_21] : memref<1x32xf32, #tpu.memory_space<vmem>>, vector<1x32xf32>
    %67 = vector.broadcast %66 : vector<1x32xf32> to vector<16x32xf32>
    %68 = arith.addf %65, %67 : vector<16x32xf32>
    %cst_22 = arith.constant 0.000000e+00 : f32
    %69 = vector.broadcast %cst_22 : f32 to vector<16x32xf32>
    %70 = arith.maximumf %68, %69 : vector<16x32xf32>
    %cst_23 = arith.constant dense<0xFF800000> : vector<32xf32>
    %71 = vector.multi_reduction <maximumf>, %70, %cst_23 [0] : vector<16x32xf32> to vector<32xf32>
    %72 = vector.shape_cast %71 : vector<32xf32> to vector<1x32xf32>
    %73 = tpu.iota {dimensions = array<i32: 0>} : vector<16x1xi32>
    %c2_i32_24 = arith.constant 2 : i32
    %74 = tpu.dynamic_rotate %70 by %c2_i32_24 dim 0 : vector<16x32xf32>, i32 -> vector<16x32xf32>
    %c-2_i32_25 = arith.constant -2 : i32
    %75 = vector.broadcast %c-2_i32_25 : i32 to vector<16x1xi32>
    %76 = arith.addi %73, %75 : vector<16x1xi32>
    %c0_i32_26 = arith.constant 0 : i32
    %77 = vector.broadcast %c0_i32_26 : i32 to vector<16x1xi32>
    %78 = arith.cmpi sge, %76, %77 : vector<16x1xi32>
    %c16_i32_27 = arith.constant 16 : i32
    %79 = vector.broadcast %c16_i32_27 : i32 to vector<16x1xi32>
    %80 = arith.cmpi slt, %76, %79 : vector<16x1xi32>
    %81 = arith.andi %78, %80 : vector<16x1xi1>
    %cst_28 = arith.constant 0.000000e+00 : f32
    %82 = vector.shape_cast %81 : vector<16x1xi1> to vector<16x1xi1>
    %83 = vector.broadcast %82 : vector<16x1xi1> to vector<16x32xi1>
    %84 = vector.broadcast %cst_28 : f32 to vector<16x32xf32>
    %85 = arith.select %83, %74, %84 : vector<16x32xi1>, vector<16x32xf32>
    %c1_i32_29 = arith.constant 1 : i32
    %86 = tpu.dynamic_rotate %70 by %c1_i32_29 dim 0 : vector<16x32xf32>, i32 -> vector<16x32xf32>
    %c-1_i32_30 = arith.constant -1 : i32
    %87 = vector.broadcast %c-1_i32_30 : i32 to vector<16x1xi32>
    %88 = arith.addi %73, %87 : vector<16x1xi32>
    %c0_i32_31 = arith.constant 0 : i32
    %89 = vector.broadcast %c0_i32_31 : i32 to vector<16x1xi32>
    %90 = arith.cmpi sge, %88, %89 : vector<16x1xi32>
    %c16_i32_32 = arith.constant 16 : i32
    %91 = vector.broadcast %c16_i32_32 : i32 to vector<16x1xi32>
    %92 = arith.cmpi slt, %88, %91 : vector<16x1xi32>
    %93 = arith.andi %90, %92 : vector<16x1xi1>
    %cst_33 = arith.constant 0.000000e+00 : f32
    %94 = vector.shape_cast %93 : vector<16x1xi1> to vector<16x1xi1>
    %95 = vector.broadcast %94 : vector<16x1xi1> to vector<16x32xi1>
    %96 = vector.broadcast %cst_33 : f32 to vector<16x32xf32>
    %97 = arith.select %95, %86, %96 : vector<16x32xi1>, vector<16x32xf32>
    %c0_i32_34 = arith.constant 0 : i32
    %98 = vector.broadcast %c0_i32_34 : i32 to vector<16x1xi32>
    %99 = arith.addi %73, %98 : vector<16x1xi32>
    %c0_i32_35 = arith.constant 0 : i32
    %100 = vector.broadcast %c0_i32_35 : i32 to vector<16x1xi32>
    %101 = arith.cmpi sge, %99, %100 : vector<16x1xi32>
    %c16_i32_36 = arith.constant 16 : i32
    %102 = vector.broadcast %c16_i32_36 : i32 to vector<16x1xi32>
    %103 = arith.cmpi slt, %99, %102 : vector<16x1xi32>
    %104 = arith.andi %101, %103 : vector<16x1xi1>
    %cst_37 = arith.constant 0.000000e+00 : f32
    %105 = vector.shape_cast %104 : vector<16x1xi1> to vector<16x1xi1>
    %106 = vector.broadcast %105 : vector<16x1xi1> to vector<16x32xi1>
    %107 = vector.broadcast %cst_37 : f32 to vector<16x32xf32>
    %108 = arith.select %106, %70, %107 : vector<16x32xi1>, vector<16x32xf32>
    %c15_i32_38 = arith.constant 15 : i32
    %109 = tpu.dynamic_rotate %70 by %c15_i32_38 dim 0 : vector<16x32xf32>, i32 -> vector<16x32xf32>
    %c1_i32_39 = arith.constant 1 : i32
    %110 = vector.broadcast %c1_i32_39 : i32 to vector<16x1xi32>
    %111 = arith.addi %73, %110 : vector<16x1xi32>
    %c0_i32_40 = arith.constant 0 : i32
    %112 = vector.broadcast %c0_i32_40 : i32 to vector<16x1xi32>
    %113 = arith.cmpi sge, %111, %112 : vector<16x1xi32>
    %c16_i32_41 = arith.constant 16 : i32
    %114 = vector.broadcast %c16_i32_41 : i32 to vector<16x1xi32>
    %115 = arith.cmpi slt, %111, %114 : vector<16x1xi32>
    %116 = arith.andi %113, %115 : vector<16x1xi1>
    %cst_42 = arith.constant 0.000000e+00 : f32
    %117 = vector.shape_cast %116 : vector<16x1xi1> to vector<16x1xi1>
    %118 = vector.broadcast %117 : vector<16x1xi1> to vector<16x32xi1>
    %119 = vector.broadcast %cst_42 : f32 to vector<16x32xf32>
    %120 = arith.select %118, %109, %119 : vector<16x32xi1>, vector<16x32xf32>
    %c14_i32_43 = arith.constant 14 : i32
    %121 = tpu.dynamic_rotate %70 by %c14_i32_43 dim 0 : vector<16x32xf32>, i32 -> vector<16x32xf32>
    %c2_i32_44 = arith.constant 2 : i32
    %122 = vector.broadcast %c2_i32_44 : i32 to vector<16x1xi32>
    %123 = arith.addi %73, %122 : vector<16x1xi32>
    %c0_i32_45 = arith.constant 0 : i32
    %124 = vector.broadcast %c0_i32_45 : i32 to vector<16x1xi32>
    %125 = arith.cmpi sge, %123, %124 : vector<16x1xi32>
    %c16_i32_46 = arith.constant 16 : i32
    %126 = vector.broadcast %c16_i32_46 : i32 to vector<16x1xi32>
    %127 = arith.cmpi slt, %123, %126 : vector<16x1xi32>
    %128 = arith.andi %125, %127 : vector<16x1xi1>
    %cst_47 = arith.constant 0.000000e+00 : f32
    %129 = vector.shape_cast %128 : vector<16x1xi1> to vector<16x1xi1>
    %130 = vector.broadcast %129 : vector<16x1xi1> to vector<16x32xi1>
    %131 = vector.broadcast %cst_47 : f32 to vector<16x32xf32>
    %132 = arith.select %130, %121, %131 : vector<16x32xi1>, vector<16x32xf32>
    %133 = tpu.concatenate %85, %97, %108, %120, %132 in 1 : vector<16x32xf32>, vector<16x32xf32>, vector<16x32xf32>, vector<16x32xf32>, vector<16x32xf32> -> vector<16x160xf32>
    %134 = arith.truncf %133 : vector<16x160xf32> to vector<16x160xbf16>
    %c0_48 = arith.constant 0 : index
    %c0_49 = arith.constant 0 : index
    %135 = vector.load %arg5[%c0_48, %c0_49] : memref<160x256xbf16, #tpu.memory_space<vmem>>, vector<160x256xbf16>
    %cst_50 = arith.constant dense<0.000000e+00> : vector<16x256xf32>
    %136 = tpu.matmul %134, %135, %cst_50 {dimension_numbers = #tpu.dot_dimension_numbers<[1], [0], [0], [1], [0, 0, 1, 1], [], []>} : vector<16x160xbf16>, vector<160x256xbf16>, vector<16x256xf32> -> vector<16x256xf32>
    %c0_51 = arith.constant 0 : index
    %c0_52 = arith.constant 0 : index
    %137 = vector.load %arg6[%c0_51, %c0_52] : memref<1x256xf32, #tpu.memory_space<vmem>>, vector<1x256xf32>
    %138 = vector.broadcast %137 : vector<1x256xf32> to vector<16x256xf32>
    %139 = arith.addf %136, %138 : vector<16x256xf32>
    %cst_53 = arith.constant 0.000000e+00 : f32
    %140 = vector.broadcast %cst_53 : f32 to vector<16x256xf32>
    %141 = arith.maximumf %139, %140 : vector<16x256xf32>
    %cst_54 = arith.constant dense<0xFF800000> : vector<256xf32>
    %142 = vector.multi_reduction <maximumf>, %141, %cst_54 [0] : vector<16x256xf32> to vector<256xf32>
    %143 = vector.shape_cast %142 : vector<256xf32> to vector<1x256xf32>
    %144 = arith.truncf %72 : vector<1x32xf32> to vector<1x32xbf16>
    %c0_55 = arith.constant 0 : index
    %c0_56 = arith.constant 0 : index
    %145 = vector.load %arg7[%c0_55, %c0_56] : memref<32x128xbf16, #tpu.memory_space<vmem>>, vector<32x128xbf16>
    %cst_57 = arith.constant dense<0.000000e+00> : vector<1x128xf32>
    %146 = tpu.matmul %144, %145, %cst_57 {dimension_numbers = #tpu.dot_dimension_numbers<[1], [0], [0], [1], [0, 0, 1, 1], [], []>} : vector<1x32xbf16>, vector<32x128xbf16>, vector<1x128xf32> -> vector<1x128xf32>
    %147 = arith.truncf %143 : vector<1x256xf32> to vector<1x256xbf16>
    %c0_58 = arith.constant 0 : index
    %c0_59 = arith.constant 0 : index
    %148 = vector.load %arg8[%c0_58, %c0_59] : memref<256x128xbf16, #tpu.memory_space<vmem>>, vector<256x128xbf16>
    %cst_60 = arith.constant dense<0.000000e+00> : vector<1x128xf32>
    %149 = tpu.matmul %147, %148, %cst_60 {dimension_numbers = #tpu.dot_dimension_numbers<[1], [0], [0], [1], [0, 0, 1, 1], [], []>} : vector<1x256xbf16>, vector<256x128xbf16>, vector<1x128xf32> -> vector<1x128xf32>
    %150 = arith.addf %146, %149 : vector<1x128xf32>
    %c0_61 = arith.constant 0 : index
    %c0_62 = arith.constant 0 : index
    %c0_63 = arith.constant 0 : index
    %151 = vector.load %arg2[%c0_61, %c0_62, %c0_63] : memref<1x1x64xf32, #tpu.memory_space<vmem>>, vector<1x1x64xf32>
    %152 = vector.shape_cast %151 : vector<1x1x64xf32> to vector<1x64xf32>
    %153 = arith.truncf %152 : vector<1x64xf32> to vector<1x64xbf16>
    %c0_64 = arith.constant 0 : index
    %c0_65 = arith.constant 0 : index
    %154 = vector.load %arg9[%c0_64, %c0_65] : memref<64x128xbf16, #tpu.memory_space<vmem>>, vector<64x128xbf16>
    %cst_66 = arith.constant dense<0.000000e+00> : vector<1x128xf32>
    %155 = tpu.matmul %153, %154, %cst_66 {dimension_numbers = #tpu.dot_dimension_numbers<[1], [0], [0], [1], [0, 0, 1, 1], [], []>} : vector<1x64xbf16>, vector<64x128xbf16>, vector<1x128xf32> -> vector<1x128xf32>
    %156 = arith.addf %150, %155 : vector<1x128xf32>
    %c0_67 = arith.constant 0 : index
    %c0_68 = arith.constant 0 : index
    %157 = vector.load %arg10[%c0_67, %c0_68] : memref<1x128xf32, #tpu.memory_space<vmem>>, vector<1x128xf32>
    %158 = arith.addf %156, %157 : vector<1x128xf32>
    %cst_69 = arith.constant 0.000000e+00 : f32
    %159 = vector.broadcast %cst_69 : f32 to vector<1x128xf32>
    %160 = arith.maximumf %158, %159 : vector<1x128xf32>
    %161 = arith.truncf %160 : vector<1x128xf32> to vector<1x128xbf16>
    %c0_70 = arith.constant 0 : index
    %c0_71 = arith.constant 0 : index
    %162 = vector.load %arg11[%c0_70, %c0_71] : memref<128x128xbf16, #tpu.memory_space<vmem>>, vector<128x128xbf16>
    %cst_72 = arith.constant dense<0.000000e+00> : vector<1x128xf32>
    %163 = tpu.matmul %161, %162, %cst_72 {dimension_numbers = #tpu.dot_dimension_numbers<[1], [0], [0], [1], [0, 0, 1, 1], [], []>} : vector<1x128xbf16>, vector<128x128xbf16>, vector<1x128xf32> -> vector<1x128xf32>
    %c0_73 = arith.constant 0 : index
    %c0_74 = arith.constant 0 : index
    %164 = vector.load %arg12[%c0_73, %c0_74] : memref<1x128xf32, #tpu.memory_space<vmem>>, vector<1x128xf32>
    %165 = arith.addf %163, %164 : vector<1x128xf32>
    %c0_75 = arith.constant 0 : index
    %c0_76 = arith.constant 0 : index
    %c0_77 = arith.constant 0 : index
    %166 = vector.load %arg13[%c0_75, %c0_76, %c0_77] : memref<1x1x128xf32, #tpu.memory_space<vmem>>, vector<1x1x128xf32>
    %167 = vector.shape_cast %166 : vector<1x1x128xf32> to vector<1x128xf32>
    %168 = vector.shape_cast %165 : vector<1x128xf32> to vector<1x1x128xf32>
    tpu.vector_store %arg13[%c0_75, %c0_76, %c0_77], %168 {strides = array<i32>} : memref<1x1x128xf32, #tpu.memory_space<vmem>>, vector<1x1x128xf32>,
    return
  }
  func.func @transform_0(%arg0: i32) -> (i32, i32, i32) {
    %c0_i32 = arith.constant 0 : i32
    %c0_i32_0 = arith.constant 0 : i32
    %c0_i32_1 = arith.constant 0 : i32
    return %arg0, %c0_i32, %c0_i32_0 : i32, i32, i32
  }
  func.func @transform_1(%arg0: i32) -> (i32, i32, i32) {
    %c0_i32 = arith.constant 0 : i32
    %c0_i32_0 = arith.constant 0 : i32
    %c0_i32_1 = arith.constant 0 : i32
    return %arg0, %c0_i32, %c0_i32_0 : i32, i32, i32
  }
  func.func @transform_2(%arg0: i32) -> (i32, i32) {
    %c0_i32 = arith.constant 0 : i32
    %c0_i32_0 = arith.constant 0 : i32
    %c0_i32_1 = arith.constant 0 : i32
    return %c0_i32, %c0_i32_0 : i32, i32
  }
  func.func @transform_3(%arg0: i32) -> (i32, i32) {
    %c0_i32 = arith.constant 0 : i32
    %c0_i32_0 = arith.constant 0 : i32
    %c0_i32_1 = arith.constant 0 : i32
    return %c0_i32, %c0_i32_0 : i32, i32
  }
  func.func @transform_4(%arg0: i32) -> (i32, i32) {
    %c0_i32 = arith.constant 0 : i32
    %c0_i32_0 = arith.constant 0 : i32
    %c0_i32_1 = arith.constant 0 : i32
    return %c0_i32, %c0_i32_0 : i32, i32
  }
  func.func @transform_5(%arg0: i32) -> (i32, i32) {
    %c0_i32 = arith.constant 0 : i32
    %c0_i32_0 = arith.constant 0 : i32
    %c0_i32_1 = arith.constant 0 : i32
    return %c0_i32, %c0_i32_0 : i32, i32
  }
  func.func @transform_6(%arg0: i32) -> (i32, i32) {
    %c0_i32 = arith.constant 0 : i32
    %c0_i32_0 = arith.constant 0 : i32
    %c0_i32_1 = arith.constant 0 : i32
    return %c0_i32, %c0_i32_0 : i32, i32
  }
  func.func @transform_7(%arg0: i32) -> (i32, i32) {
    %c0_i32 = arith.constant 0 : i32
    %c0_i32_0 = arith.constant 0 : i32
    %c0_i32_1 = arith.constant 0 : i32
    return %c0_i32, %c0_i32_0 : i32, i32
  }
  func.func @transform_8(%arg0: i32) -> (i32, i32) {
    %c0_i32 = arith.constant 0 : i32
    %c0_i32_0 = arith.constant 0 : i32
    %c0_i32_1 = arith.constant 0 : i32
    return %c0_i32, %c0_i32_0 : i32, i32
  }
  func.func @transform_9(%arg0: i32) -> (i32, i32) {
    %c0_i32 = arith.constant 0 : i32
    %c0_i32_0 = arith.constant 0 : i32
    %c0_i32_1 = arith.constant 0 : i32
    return %c0_i32, %c0_i32_0 : i32, i32
  }
  func.func @transform_10(%arg0: i32) -> (i32, i32) {
    %c0_i32 = arith.constant 0 : i32
    %c0_i32_0 = arith.constant 0 : i32
    %c0_i32_1 = arith.constant 0 : i32
    return %c0_i32, %c0_i32_0 : i32, i32
  }
  func.func @transform_11(%arg0: i32) -> (i32, i32) {
    %c0_i32 = arith.constant 0 : i32
    %c0_i32_0 = arith.constant 0 : i32
    %c0_i32_1 = arith.constant 0 : i32
    return %c0_i32, %c0_i32_0 : i32, i32
  }
  func.func @transform_12(%arg0: i32) -> (i32, i32, i32) {
    %c0_i32 = arith.constant 0 : i32
    %c0_i32_0 = arith.constant 0 : i32
    %c0_i32_1 = arith.constant 0 : i32
    return %arg0, %c0_i32, %c0_i32_0 : i32, i32, i32
  }
}

</mosaic_0001>

<bundles_post_ra>
// kernel: cnn_residual_forward_pallas.1
= control target key start
LH: loop header
LB: loop body
LE: loop exit
PB: predicated region body
PF: predicated region fallthrough
CT: control target
= control target key end

     0   :  { %s2495_s0 = inlined_call_operand.vmem [shape: f32[2,16,4], index: 0, kind: input, shape index: {}]   ;;  %s2496_s1 = inlined_call_operand.hbm [shape: f32[2,1,64], index: 1, kind: input, shape index: {}]   ;;  %s2497_s2 = inlined_call_operand.hbm [shape: bf16[20,32], index: 2, kind: input, shape index: {}]   ;;  %s2498_s3 = inlined_call_operand.vmem [shape: f32[1,32], index: 3, kind: input, shape index: {}]   ;;  %s2499_s4 = inlined_call_operand.hbm [shape: bf16[160,256], index: 4, kind: input, shape index: {}]   ;;  %s2500_s5 = inlined_call_operand.hbm [shape: f32[1,256], index: 5, kind: input, shape index: {}]   ;;  %s2501_s6 = inlined_call_operand.vmem [shape: bf16[32,128], index: 6, kind: input, shape index: {}]   ;;  %s2502_s7 = inlined_call_operand.hbm [shape: bf16[256,128], index: 7, kind: input, shape index: {}]   ;;  %s2503_s8 = inlined_call_operand.vmem [shape: bf16[64,128], index: 8, kind: input, shape index: {}]   ;;  %s2504_s9 = inlined_call_operand.vmem [shape: f32[1,128], index: 9, kind: input, shape index: {}]   ;;  %s2505_s10 = inlined_call_operand.hbm [shape: bf16[128,128], index: 10, kind: input, shape index: {}]   ;;  %s2506_s11 = inlined_call_operand.vmem [shape: f32[1,128], index: 11, kind: input, shape index: {}]   ;;  %s2507_s12 = inlined_call_operand.hbm [shape: f32[2,1,128], index: 12, kind: output, shape index: {}]  }
   0x1   :  { %2508 = sst [smem:[#allocation19_spill]] %s2497_s2 }
   0x2   :  { %2509 = sst [smem:[#allocation20_spill]] %s2499_s4 }
   0x3   :  { %2510 = sst [smem:[#allocation21_spill]] %s2500_s5 }
   0x4   :  { %2511 = sst [smem:[#allocation22_spill]] %s2502_s7 }
   0x5   :  { %2512 = sst [smem:[#allocation23_spill]] %s2506_s11 }
   0x6   :  { %17 = vsyncpa [#allocation3], 0 }
   0x7   :  { %19 = vsyncpa [#allocation3 + $0x1], 0 }
   0x8   :  { %20 = vsyncpa [#allocation6], 0 }
   0x9   :  { %21 = vsyncpa [#allocation9], 0 }
   0xa   :  { %22 = vsyncpa [#allocation12], 0 }
   0xb   :  { %23 = vsyncpa [#allocation4], 0 }
   0xc   :  { %25 = vsyncpa [#allocation4 + $0x1], 0  ;;  %s2201_s21 = smov 0   ;;  %s2203_s22 = smov 0  }
   0xd   :  { %s2205_s23 = smov 0   ;;  %s2207_s24 = smov 0  }
   0xe LB: > { %s2513_s2 = sld [smem:[#allocation19_spill]]  ;;  %s2225_s28 = sadd.s32 4294967295, %s2118_s24   ;;  %s2118_s24 = sphi %s2207_s24, %s2528_s24   ;;  %s2114_s23 = sphi %s2205_s23, %s2527_s23   ;;  %s2110_s22 = sphi %s2203_s22, %s2526_s22   ;;  %s2106_s21 = sphi %s2201_s21, %s2525_s21  }
   0xf   : > { %p1438_p0 = scmp.ge.s32.totalorder %s2118_s24, 1  ;;  %p78_p1 = scmp.eq.s32.totalorder %s2225_s28, 0 }
  0x10   : > { %p324_p2 = scmp.lt.s32.totalorder %s2118_s24, 3  ;;  %s2120_s30 = smov [#allocation5]  }
  0x11   : > { %s337_s13 = sshll.u32 %s2120_s30, 4  ;;  %s2515_s5 = sld [smem:[#allocation21_spill]]  ;;  %s338_s13 = int_to_ptr.vmem [resolvable:$true] %s337_s13 }
  0x12   : > { %p2230_p3 = pnand %p1438_p0, %p324_p2  ;;  %s2517_s4 = sld [smem:[#allocation20_spill]] }
  0x13   : > { %s2121_s25 = smov [#allocation8]   ;;  %s2122_s30 = smov 64  }
  0x14   : > { %s335_s27 = sshll.u32 %s2513_s2, 4  ;;  %p1740_p4 = pneg %p2230_p3  ;;  %s336_s27 = int_to_ptr.hbm [resolvable:$true] %s335_s27 }
  0x15   : > { %s369_s26 = sshll.u32 %s2121_s25, 4  ;;  %s2123_s2 = smov 4   ;;  %s370_s26 = int_to_ptr.vmem [resolvable:$true] %s369_s26 }
  0x16   : > { %p2242_p6 = pnand %p1740_p4, %p78_p1  ;;  %s2124_s14 = smov [#allocation7]  }
  0x17   : > { %s367_s16 = sshll.u32 %s2515_s5, 4  ;;  %s354_s15 = sshll.u32 %s2124_s14, 4  ;;  %s368_s16 = int_to_ptr.hbm [resolvable:$true] %s367_s16  ;;  %s355_s15 = int_to_ptr.vmem [resolvable:$true] %s354_s15 }
  0x18   : > { %s352_s20 = sshll.u32 %s2517_s4, 4  ;;  %s2518_s7 = sld [smem:[#allocation22_spill]]  ;;  %s353_s20 = int_to_ptr.hbm [resolvable:$true] %s352_s20 }
  0x19   : > { %1743 = dma.hbm_to_vmem [thread:$0]  (!%p2242_p6), %s336_s27, 192, %s338_s13, [#allocation6], %s2122_s30, %s2122_s30, %s2123_s2  }
  0x1a   : > { %1749 = dma.hbm_to_vmem [thread:$0]  (!%p2242_p6), %s368_s16, 32, %s370_s26, [#allocation9]  }
  0x1b   : > { %s2125_s19 = smov 128   ;;  %s2126_s25 = smov 8  }
  0x1c   : > { %1746 = dma.hbm_to_vmem [thread:$0]  (!%p2242_p6), %s353_s20, 2560, %s355_s15, [#allocation6], %s2125_s19, %s2125_s19, %s2126_s25  }
  0x1d   : > { %s2127_s27 = smov [#allocation10]   ;;  %s401_s5 = sshll.u32 %s2505_s10, 4  ;;  %s402_s5 = int_to_ptr.hbm [resolvable:$true] %s401_s5 }
  0x1e   : > { %s381_s18 = sshll.u32 %s2518_s7, 4  ;;  %s383_s13 = sshll.u32 %s2127_s27, 4  ;;  %s382_s18 = int_to_ptr.hbm [resolvable:$true] %s381_s18  ;;  %s384_s13 = int_to_ptr.vmem [resolvable:$true] %s383_s13 }
  0x1f   : > { %1752 = dma.hbm_to_vmem [thread:$0]  (!%p2242_p6), %s382_s18, 2048, %s384_s13, [#allocation9], %s2122_s30, %s2122_s30, %s2123_s2  }
  0x20   : > { %s2128_s11 = smov [#allocation11]   ;;  %s1437_s14 = sadd.s32 4294967294, %s2118_s24  }
  0x21   : > { %s403_s20 = sshll.u32 %s2128_s11, 4  ;;  %s2267_s15 = sadd.s32 1, %s2118_s24   ;;  %s404_s20 = int_to_ptr.vmem [resolvable:$true] %s403_s20 }
  0x22   : > { %1755 = dma.hbm_to_vmem [thread:$0]  (!%p2242_p6), %s402_s5, 1024, %s404_s20, [#allocation12], %s2122_s30, %s2122_s30, %s2123_s2  }
  0x23   : > { %s64_s19 = sadd.s32 1, %s2114_s23  ;;  %s61_s25 = ssub.s32 %s2118_s24, %s2267_s15 }
  0x24   : > { %p71_p7 = scmp.ne.s32.totalorder %s2114_s23, %s2110_s22  ;;  %p62_p8 = scmp.eq.s32.totalorder %s61_s25, 0 }
  0x25   : > { %p72_p9 = scmp.eq.s32.totalorder %s2118_s24, 0  ;;  %p77_p10 = scmp.ne.s32.totalorder %s2110_s22, %s2106_s21 }
  0x26   : > { %p311_p11 = scmp.eq.s32.totalorder %s2225_s28, 1  ;;  %p317_p0 = scmp.eq.s32.totalorder %s1437_s14, 1 }
  0x27   : > { %s2279_s18 = scalar_select %p62_p8, %s2114_s23, %s64_s19  }
  0x28   : > { %p2283_p12 = por %p78_p1, %p77_p10  ;;  %p2287_p13 = por %p311_p11, %p71_p7 }
  0x29   : > { %p73_p2 = por %p72_p9, %p71_p7  ;;  %s428_s30 = sand.u32 1, %s2114_s23  }
  0x2a   : > { %p2292_p4 = por %p317_p0, %p77_p10  ;;  %p1769_p6 = scmp.lt.s32.totalorder %s2118_s24, 2 }
  0x2b   : > { %s434_s26 = scalar_lea.hbm %s2496_s1, %s2118_s24  ;;  %s431_s11 = scalar_lea.vmem [#allocation2], %s428_s30 }
  0x2c   : > { %s436_s5 = sshll.u32 %s434_s26, 4  ;;  %s438_s20 = sshll.u32 %s431_s11, 4  ;;  %s437_s5 = int_to_ptr.hbm [resolvable:$true] %s436_s5  ;;  %s439_s20 = int_to_ptr.vmem [resolvable:$true] %s438_s20 }
  0x2d   : > { %p2301_p8 = pnand %p1769_p6, %p73_p2  ;;  %s429_s14 = scalar_lea.sflag [#allocation3], %s428_s30 }
  0x2e   : > { %s2010_s25 = sshra.s32 %s437_s5, 4  ;;  %s2017_s26 = scalar_lea.hbm %s2496_s1, 2  ;;  %s2011_s25 = int_to_ptr.hbm [resolvable:$true] %s2010_s25 }
  0x2f   : > { %s2012_s4 = scalar_lea.hbm %s2011_s25, 1  ;;  %p2014_p9 = pneg %p2301_p8 }
  0x30   : > { %p2013_p7 = scmp.ne.s32.totalorder %s2011_s25, %s2012_s4  ;;  %p2018_p0 = scmp.lt.s32.totalorder %s2011_s25, %s2496_s1 }
  0x31   : > { %p2019_p2 = scmp.lt.s32.totalorder %s2017_s26, %s2012_s4 }
  0x32   : > { %p2015_p10 = pnand %p2014_p9, %p2013_p7 }
  0x33   : > { %p2020_p6 = por %p2019_p2, %p2018_p0 }
  0x34   : > { %p2016_p11 = pneg %p2015_p10 }
  0x36   : > { %p2021_p5 = pnand %p2020_p6, %p2016_p11 }
  0x38   : > { %2024 = shalt.err (!%p2021_p5)
}
  0x39   : > { %1759 = dma.hbm_to_vmem [thread:$0]  (!%p2301_p8), %s437_s5, 16, %s439_s20, %s429_s14  }
  0x3a   : > { %447 = sbr.rel (%p2230_p3) target bundleno = 918 (0x396), region = 68  ;;  %s2318_s30 = sand.u32 (!%p2230_p3), 1, %s2110_s22  }
  0x3b   : > { %s450_s13 = scalar_lea.sflag (!%p2230_p3), [#allocation3], %s2318_s30  ;;  %s452_s16 = scalar_lea.vmem (!%p2230_p3), [#allocation2], %s2318_s30 }
  0x3f   : > { %2085 = dma.done.wait (%p2283_p12), %s450_s13, 16  }
  0x40   : > { %2087 = vsyncadd (%p2283_p12), %s450_s13, 4294967280 }
  0x41   : > { %2089 = dma.done.wait (%p78_p1), [#allocation6], 2752  }
  0x42   : > { %2091 = vsyncadd (%p78_p1), [#allocation6], 4294964544 }
  0x43   : > { %2093 = dma.done.wait (%p78_p1), [#allocation9], 2080  }
  0x44   : > { %2095 = vsyncadd (%p78_p1), [#allocation9], 4294965216 }
  0x45   : > { %2097 = dma.done.wait (%p78_p1), [#allocation12], 1024  }
  0x46   : > { %2099 = vsyncadd (%p78_p1), [#allocation12], 4294966272  ;;  %p522_p3 = scmp.lt.s32.totalorder %s2225_s28, 1  ;;  %v530_v0 = vlaneseq  ;;  %s2129_s20 = smov 4   ;;  %v668_v27 = vld [vmem:[#allocation5 + $0x8] sm:$0x3] }
  0x47   : > { %s2130_s19 = smov 12   ;;  %s2131_s14 = smov 8   ;;  %v678_v28 = vunpack.c.l.b16 %v668_v27  ;;  %vm686_vm6 = vcmask 1041408   ;;  %v1665_v31 = vld [vmem:[#allocation5] sm:$0xff]  ;;  %vm653_vm9 = vcmask 31744   ;;  %vm656_vm10 = vcmask 64512  }
  0x48   : > { %s523_s4 = scalar_select %p522_p3, %s2225_s28, 1  ;;  %v2340_v1 = vshrl.u32 %v530_v0, 7  ;;  %vm659_vm11 = vcmask 97280   ;;  %vm662_vm12 = vcmask 130048   ;;  %vm682_vm13 = vcmask 162816  }
  0x49   : > { %s2132_s25 = smov 16   ;;  %v680_v29 = vpack.c.b16 %v678_v28, %v678_v28  ;;  %v1532_v59 = vld [vmem:[#allocation7 + $0x90] sm:$0xf]  ;;  %v1685_v60 = vld [vmem:[#allocation7 + $0x94] sm:$0xf0]  ;;  %vm706_vm14 = vcmask 261120  }
  0x4a   : > { %s1664_s7 = sshll.u32 %s523_s4, 4  ;;  %v2343_v2 = vadd.s32 4294967295, %v2340_v1  ;;  %v532_v3 = vadd.s32 8, %v2340_v1  ;;  %vm554_vm0 = vcmp.lt.s32.totalorder %v2340_v1, 1  ;;  %vm585_vm1 = vcmp.lt.s32.totalorder %v2340_v1, 7  ;;  %s2133_s13 = smov 96  }
  0x4b   : > { %s526_s5 = scalar_lea.vmem %s2495_s0, %s1664_s7  ;;  %vm604_vm4 = vcmp.lt.s32.totalorder %v2340_v1, 6  ;;  %v688_v30 = vsel %vm686_vm6, %v680_v29, 0  ;;  %v2378_v33 = vadd.s32 4294967294, %v2340_v1  ;;  %vm535_vm7 = vcmp.lt.s32.totalorder %v2340_v1, 2  ;;  %v1684_v61 = vld [vmem:[#allocation7 + $0x94] sm:$0xf] }
  0x4c   : > { %v2351_v4 = vadd.s32 1, %v532_v3  ;;  %v528_v5 = vld [vmem:[%s526_s5] sm:$0xff]  ;;  %v529_v6 = vld [vmem:[%s526_s5 + $0x8] sm:$0xff]  ;;  %vm559_vm2 = vcmp.ge.s32.totalorder %v2343_v2, 0  ;;  %v2354_v7 = vadd.s32 2, %v532_v3  ;;  %696 = vmatpush.bf16.msra.mxu0 %v688_v30  ;;  %v1533_v62 = vor.u32 %v1685_v60, %v1532_v59  ;;  %s2134_s4 = smov 32  }
  0x4d   : > { %v552_v8 = vrot.slane %v528_v5, 7  ;;  %v553_v9 = vrot.slane %v529_v6, 7  ;;  %v583_v10 = vrot.slane %v528_v5, 1  ;;  %v584_v11 = vrot.slane %v529_v6, 1  ;;  %v1534_v63 = vld [vmem:[#allocation7 + $0x98] sm:$0xf0] }
  0x4e   : > { %vm593_vm3 = vcmp.lt.s32.totalorder %v2351_v4, 16  ;;  %v602_v12 = vrot.slane %v528_v5, 2  ;;  %v603_v13 = vrot.slane %v529_v6, 2  ;;  %vm612_vm5 = vcmp.lt.s32.totalorder %v2354_v7, 16  ;;  %v1524_v3 = vld [vmem:[#allocation7 + $0x80] sm:$0xf]  ;;  %925 = vmatpush.bf16.msra.mxu3 %v1533_v62 }
  0x4f   : > { %v555_v14 = vsel %vm554_vm0, %v552_v8, %v553_v9  ;;  %v556_v15 = vsel %vm554_vm0, %v553_v9, %v552_v8  ;;  %v586_v16 = vsel %vm585_vm1, %v583_v10, %v584_v11  ;;  %v587_v17 = vsel %vm585_vm1, %v584_v11, %v583_v10  ;;  %v1526_v9 = vld [vmem:[#allocation7 + $0x88] sm:$0xf0]  ;;  %v1516_v11 = vld [vmem:[#allocation7 + $0x70] sm:$0xf]  ;;  %s2135_s7 = smov 64   ;;  %s521_s26 = scalar_lea.vmem [#allocation13], %s2318_s30 }
  0x50   : > { %v569_v18 = vsel %vm559_vm2, %v556_v15, 0.0  ;;  %v601_v19 = vsel %vm593_vm3, %v587_v17, 0.0  ;;  %v606_v22 = vsel %vm604_vm4, %v603_v13, %v602_v12  ;;  %v605_v23 = vsel %vm604_vm4, %v602_v12, %v603_v13  ;;  %697 = vmatpush.bf16.msra.mxu0 %v1665_v31  ;;  %v1681_v12 = vld [vmem:[#allocation7 + $0x74] sm:$0xf0]  ;;  %v1680_v13 = vld [vmem:[#allocation7 + $0x74] sm:$0xf] }
  0x51   : > { %v1824_v20 = vpack.i.bf16 %v555_v14, %v569_v18  ;;  %v1834_v21 = vpack.i.bf16 %v601_v19, %v586_v16  ;;  %v620_v24 = vsel %vm612_vm5, %v606_v22, 0.0  ;;  %v1829_v25 = vpack.i.bf16 %v529_v6, %v528_v5  ;;  %v1518_v15 = vld [vmem:[#allocation7 + $0x78] sm:$0xf0]  ;;  %v1859_v17 = vld [vmem:[%s2498_s3] ss:$0 sm:$0xff]  ;;  %s1313_s11 = sshll.u32 %s521_s26, 4  ;;  %s1314_s11 = int_to_ptr.vmem [resolvable:$true] %s1313_s11 }
  0x52   : > { %v1839_v26 = vpack.i.bf16 %v620_v24, %v605_v23  ;;  %v534_v32 = vrot.slane %v529_v6, 6  ;;  %v533_v35 = vrot.slane %v528_v5, 6  ;;  %vm540_vm8 = vcmp.ge.s32.totalorder %v2378_v33, 0  ;;  %v1683_v5 = vld [vmem:[#allocation7 + $0x84] sm:$0xf0]  ;;  %s2060_s17 = scalar_lea.hbm %s2507_s12, 2 }
  0x53   : > { %1825 = vrot.lane.b32.xlu0 %v1824_v20, %s2129_s20  ;;  %1835 = vrot.lane.b32.xlu1 %v1834_v21, %s2130_s19  ;;  %v1537_v0 = vor.u32 %v1684_v61, %v1534_v63  ;;  %v1682_v6 = vld [vmem:[#allocation7 + $0x84] sm:$0xf]  ;;  %v1525_v8 = vor.u32 %v1683_v5, %v1524_v3  ;;  %v1517_v14 = vor.u32 %v1681_v12, %v1516_v11  ;;  %v1510_v1 = vld [vmem:[#allocation7 + $0x68] sm:$0xf0]  ;;  %v1492_v59 = vld [vmem:[#allocation7 + $0x40] sm:$0xf]  ;;  %s1311_s20 = scalar_lea.hbm %s2507_s12, %s2225_s28 }
  0x54   : > { %v537_v37 = vsel %vm535_vm7, %v534_v32, %v533_v35  ;;  %v536_v40 = vsel %vm535_vm7, %v533_v35, %v534_v32  ;;  %v1529_v10 = vor.u32 %v1682_v6, %v1526_v9  ;;  %v1521_v16 = vor.u32 %v1680_v13, %v1518_v15  ;;  %v1675_v60 = vld [vmem:[#allocation7 + $0x44] sm:$0xf0]  ;;  %v1674_v61 = vld [vmem:[#allocation7 + $0x44] sm:$0xf]  ;;  %v1494_v63 = vld [vmem:[#allocation7 + $0x48] sm:$0xf0] }
  0x55   : > { %v550_v41 = vsel %vm540_vm8, %v537_v37, 0.0  ;;  %953 = vmatpush.bf16.msrb.mxu0 %v1537_v0  ;;  %926 = vmatpush.bf16.msra.mxu3 %v1525_v8  ;;  %v1493_v62 = vor.u32 %v1675_v60, %v1492_v59  ;;  %v1484_v0 = vld [vmem:[#allocation7 + $0x30] sm:$0xf]  ;;  %v1673_v3 = vld [vmem:[#allocation7 + $0x34] sm:$0xf0]  ;;  %v1497_v5 = vor.u32 %v1674_v61, %v1494_v63  ;;  %vm768_vm15 = vcmask 523264  }
  0x56   : > { %905 = vmatpush.bf16.msra.mxu1 %v1517_v14  ;;  %v1672_v6 = vld [vmem:[#allocation7 + $0x34] sm:$0xf]  ;;  %v1486_v8 = vld [vmem:[#allocation7 + $0x38] sm:$0xf0]  ;;  %v1485_v9 = vor.u32 %v1673_v3, %v1484_v0  ;;  %v1476_v11 = vld [vmem:[#allocation7 + $0x20] sm:$0xf] }
  0x57   : > { %v1671_v12 = vld [vmem:[#allocation7 + $0x24] sm:$0xf0]  ;;  %v1670_v13 = vld [vmem:[#allocation7 + $0x24] sm:$0xf]  ;;  %v1478_v14 = vld [vmem:[#allocation7 + $0x28] sm:$0xf0] }
  0x58   : > { %v1477_v15 = vor.u32 %v1671_v12, %v1476_v11  ;;  %v1691_v59 = vld [vmem:[#allocation10 + $0x18] sm:$0xff]  ;;  %v1706_v60 = vld [vmem:[%s2503_s8 + $0x10] sm:$0xff]  ;;  %v1690_v63 = vld [vmem:[#allocation10 + $0x10] sm:$0xff] }
  0x59   : > { %954 = vmatpush.bf16.msrb.mxu0 %v1529_v10  ;;  %933 = vmatpush.bf16.msrb.mxu3 %v1521_v16  ;;  %v1489_v10 = vor.u32 %v1672_v6, %v1486_v8  ;;  %v1481_v16 = vor.u32 %v1670_v13, %v1478_v14  ;;  %v1700_v61 = vld [vmem:[#allocation10 + $0x60] sm:$0xff]  ;;  %v1705_v0 = vld [vmem:[%s2503_s8 + $0x8] sm:$0xff]  ;;  %v1704_v6 = vld [vmem:[%s2503_s8] sm:$0xff] }
  0x5a   : > { %v1699_v3 = vld [vmem:[#allocation10 + $0x58] sm:$0xff]  ;;  %v1698_v8 = vld [vmem:[#allocation10 + $0x50] sm:$0xff]  ;;  %v1688_v11 = vld [vmem:[#allocation10] sm:$0xff] }
  0x5b   : > { %1830 = vrot.lane.b32.xlu0 %v1829_v25, %s2131_s14  ;;  %1840 = vrot.lane.b32.xlu1 %v1839_v26, %s2132_s25  ;;  %v1697_v12 = vld [vmem:[#allocation10 + $0x48] sm:$0xff]  ;;  %v796_v14 = vld [vmem:[#allocation8] sm:$0x3]  ;;  %s2523_s25 = sld [smem:[#allocation23_spill]] }
  0xc5   : > { %v1826_v34 = vpop.permute.xlu0 %1825  ;;  %v1836_v36 = vpop.permute.xlu1 %1835 }
  0xc6   : > { %v1828_v38 = vunpack.i.h.bf16 %v1826_v34  ;;  %v1827_v39 = vunpack.i.l.bf16 %v1826_v34  ;;  %v1838_v50 = vunpack.i.h.bf16 %v1836_v36  ;;  %v1837_v51 = vunpack.i.l.bf16 %v1836_v36 }
  0xc8   : > { %v654_v48 = vsel %vm653_vm9, %v550_v41, %v1827_v39  ;;  %v655_v49 = vsel %vm653_vm9, %v536_v40, %v1828_v38 }
  0xcd   : > { %v1831_v42 = vpop.permute.xlu0 %1830  ;;  %v1841_v43 = vpop.permute.xlu1 %1840 }
  0xce   : > { %v1833_v44 = vunpack.i.h.bf16 %v1831_v42  ;;  %v1832_v45 = vunpack.i.l.bf16 %v1831_v42  ;;  %v1843_v46 = vunpack.i.h.bf16 %v1841_v43  ;;  %v1842_v47 = vunpack.i.l.bf16 %v1841_v43 }
  0xd0   : > { %v657_v52 = vsel %vm656_vm10, %v654_v48, %v1832_v45  ;;  %v658_v53 = vsel %vm656_vm10, %v655_v49, %v1833_v44  ;;  %v1508_v48 = vld [vmem:[#allocation7 + $0x60] sm:$0xf]  ;;  %v1679_v49 = vld [vmem:[#allocation7 + $0x64] sm:$0xf0] }
  0xd1   : > { %v660_v54 = vsel %vm659_vm11, %v657_v52, %v1837_v51  ;;  %v661_v55 = vsel %vm659_vm11, %v658_v53, %v1838_v50  ;;  %v1678_v50 = vld [vmem:[#allocation7 + $0x64] sm:$0xf]  ;;  %v1509_v51 = vor.u32 %v1679_v49, %v1508_v48  ;;  %v1500_v52 = vld [vmem:[#allocation7 + $0x50] sm:$0xf]  ;;  %v1677_v53 = vld [vmem:[#allocation7 + $0x54] sm:$0xf0] }
  0xd2   : > { %v663_v56 = vsel %vm662_vm12, %v660_v54, %v1842_v47  ;;  %v664_v57 = vsel %vm662_vm12, %v661_v55, %v1843_v46  ;;  %v1513_v54 = vor.u32 %v1678_v50, %v1510_v1  ;;  %v1676_v55 = vld [vmem:[#allocation7 + $0x54] sm:$0xf] }
  0xd3   : > { %v665_v58 = vpack.c.bf16 %v664_v57, %v663_v56  ;;  %v1502_v56 = vld [vmem:[#allocation7 + $0x58] sm:$0xf0]  ;;  %906 = vmatpush.bf16.msra.mxu1 %v1509_v51  ;;  %v1501_v57 = vor.u32 %v1677_v53, %v1500_v52 }
  0xd4   : > { %934 = vmatpush.bf16.msrb.mxu3 %v1513_v54  ;;  %v1695_v52 = vld [vmem:[#allocation10 + $0x38] sm:$0xff]  ;;  %v1693_v54 = vld [vmem:[#allocation10 + $0x28] sm:$0xff] }
  0xd5   : > { %1457 = vmatmul.msk.bf16.vlgmr.msra.gmra.mxu0 %vm682_vm13, %v665_v58  ;;  %v1505_v58 = vor.u32 %v1676_v55, %v1502_v56  ;;  %1114 = vmatpush.bf16.msra.mxu2 %v1695_v52  ;;  %v1703_v53 = vld [vmem:[#allocation10 + $0x78] sm:$0xff]  ;;  %v1702_v55 = vld [vmem:[#allocation10 + $0x70] sm:$0xff]  ;;  %v1692_v56 = vld [vmem:[#allocation10 + $0x20] sm:$0xff] }
  0xd6   : > { %1127 = vmatpush.bf16.msra.mxu0 %v1703_v53 }
  0xd7   : > { %907 = vmatpush.bf16.msra.mxu1 %v1501_v57  ;;  %v1707_v57 = vld [vmem:[%s2503_s8 + $0x18] sm:$0xff] }
  0xd8   : > { %935 = vmatpush.bf16.msrb.mxu3 %v1505_v58  ;;  %v1701_v58 = vld [vmem:[#allocation10 + $0x68] sm:$0xff] }
  0xda   : > { %1128 = vmatpush.bf16.msra.mxu0 %v1702_v55 }
  0xdb   : > { %908 = vmatpush.bf16.msra.mxu1 %v1493_v62 }
  0xdc   : > { %936 = vmatpush.bf16.msrb.mxu3 %v1497_v5  ;;  %v1689_v5 = vld [vmem:[#allocation10 + $0x8] sm:$0xff] }
  0xde   : > { %1129 = vmatpush.bf16.msra.mxu0 %v1701_v58 }
  0xdf   : > { %909 = vmatpush.bf16.msra.mxu1 %v1485_v9  ;;  %v1168_v9 = vld [vmem:[%s452_s16] sm:$0x1] }
  0xe0   : > { %937 = vmatpush.bf16.msrb.mxu3 %v1489_v10  ;;  %v1169_v10 = vpack.c.bf16 %v1168_v9, %v1168_v9 }
  0xe2   : > { %1130 = vmatpush.bf16.msra.mxu0 %v1700_v61 }
  0xe3   : > { %910 = vmatpush.bf16.msra.mxu1 %v1477_v15 }
  0xe4   : > { %938 = vmatpush.bf16.msrb.mxu3 %v1481_v16  ;;  %v798_v16 = vperm.slane %v796_v14, 0 }
  0xe6   : > { %1131 = vmatpush.bf16.msra.mxu0 %v1699_v3 }
  0xea   : > { %1132 = vmatpush.bf16.msra.mxu0 %v1698_v8 }
  0xee   : > { %1133 = vmatpush.bf16.msra.mxu0 %v1697_v12 }
 0x152   : > { %v699_v18 = vpop.f32.mrf.mxu0 }
 0x153   : > { %v700_v19 = vadd.f32 %v1859_v17, %v699_v18  ;;  %v1669_v18 = vld [vmem:[#allocation7 + $0x14] sm:$0xf0] }
 0x155   : > { %v704_v20 = vmax.f32 %v700_v19, 0.0  ;;  %v1668_v19 = vld [vmem:[#allocation7 + $0x14] sm:$0xf] }
 0x157   : > { %v736_v24 = vrot.slane %v704_v20, 2  ;;  %v730_v25 = vrot.slane %v704_v20, 1  ;;  %v722_v28 = vrot.slane %v704_v20, 7  ;;  %v716_v31 = vrot.slane %v704_v20, 6 }
 0x158   : > { %v707_v32 = vsel %vm706_vm14, %v704_v20, -inf }
 0x15a   : > { %v701_v21 = vpop.f32.mrf.mxu0 }
 0x15b   : > { %v702_v22 = vadd.f32 %v1859_v17, %v701_v21  ;;  %v1468_v17 = vld [vmem:[#allocation7 + $0x10] sm:$0xf] }
 0x15c   : > { %v1469_v21 = vor.u32 %v1669_v18, %v1468_v17  ;;  %v1696_v17 = vld [vmem:[#allocation10 + $0x40] sm:$0xff] }
 0x15d   : > { %v705_v23 = vmax.f32 %v702_v22, 0.0  ;;  %1134 = vmatpush.bf16.msra.mxu0 %v1696_v17 }
 0x15e   : > { %911 = vmatpush.bf16.msra.mxu1 %v1469_v21 }
 0x15f   : > { %v737_v26 = vrot.slane %v705_v23, 2  ;;  %v731_v27 = vrot.slane %v705_v23, 1  ;;  %v723_v29 = vrot.slane %v705_v23, 7  ;;  %v717_v30 = vrot.slane %v705_v23, 6 }
 0x160   : > { %v708_v34 = vsel %vm706_vm14, %v705_v23, -inf  ;;  %v1849_v2 = vpack.i.bf16 %v705_v23, %v704_v20  ;;  %v1470_v20 = vld [vmem:[#allocation7 + $0x18] sm:$0xf0]  ;;  %v1460_v23 = vld [vmem:[#allocation7] sm:$0xf] }
 0x161   : > { %v738_v35 = vsel %vm604_vm4, %v736_v24, %v737_v26  ;;  %v739_v36 = vsel %vm604_vm4, %v737_v26, %v736_v24  ;;  %v732_v37 = vsel %vm585_vm1, %v730_v25, %v731_v27  ;;  %v733_v38 = vsel %vm585_vm1, %v731_v27, %v730_v25  ;;  %v1667_v24 = vld [vmem:[#allocation7 + $0x4] sm:$0xf0]  ;;  %v1666_v25 = vld [vmem:[#allocation7 + $0x4] sm:$0xf]  ;;  %v1462_v27 = vld [vmem:[#allocation7 + $0x8] sm:$0xf0] }
 0x162   : > { %v741_v39 = vsel %vm612_vm5, %v739_v36, 0.0  ;;  %v735_v40 = vsel %vm593_vm3, %v733_v38, 0.0  ;;  %v724_v41 = vsel %vm554_vm0, %v722_v28, %v723_v29  ;;  %v725_v42 = vsel %vm554_vm0, %v723_v29, %v722_v28  ;;  %v1687_v29 = vld [vmem:[%s2501_s6 + $0x8] sm:$0xff] }
 0x163   : > { %v775_v43 = vpack.c.bf16 %v741_v39, %v738_v35  ;;  %v1854_v44 = vpack.i.bf16 %v735_v40, %v732_v37  ;;  %v726_v45 = vsel %vm559_vm2, %v725_v42, 0.0  ;;  %v2413_v46 = vsel %vm535_vm7, %v716_v31, %v717_v30 }
 0x164   : > { %v1844_v7 = vpack.i.bf16 %v724_v41, %v726_v45  ;;  %v2417_v4 = vsel %vm535_vm7, %v717_v30, %v716_v31  ;;  %v2419_v47 = vmax.f32 %v707_v32, %v708_v34  ;;  %v1473_v22 = vor.u32 %v1668_v19, %v1470_v20  ;;  %v1686_v31 = vld [vmem:[%s2501_s6] sm:$0xff]  ;;  %v1715_v19 = vld [vmem:[#allocation11 + $0x38] sm:$0xff] }
 0x165   : > { %1538 = vmatmul.msk.bf16.vlgmr.msra.gmra.mxu3 %vm706_vm14, %v775_v43  ;;  %1539 = vmatmul.msk.bf16.vlgmr.msrb.gmra.mxu0 %vm706_vm14, %v775_v43  ;;  %v1461_v26 = vor.u32 %v1667_v24, %v1460_v23  ;;  %v1465_v28 = vor.u32 %v1666_v25, %v1462_v27  ;;  %v720_v39 = vsel %vm540_vm8, %v2417_v4, 0.0  ;;  %vm771_vm0 = vcmask 785408   ;;  %v1714_v23 = vld [vmem:[#allocation11 + $0x30] sm:$0xff] }
 0x166   : > { %1855 = vrot.lane.b32.xlu0 %v1854_v44, %s2133_s13  ;;  %1845 = vrot.lane.b32.xlu2 %v1844_v7, %s2134_s4  ;;  %v710_v34 = vrot.slane %v2419_v47, 4  ;;  %s1315_s13 = sshll.u32 %s1311_s20, 4  ;;  %s1303_s4 = scalar_lea.sflag [#allocation4], %s2318_s30  ;;  %s1316_s13 = int_to_ptr.hbm [resolvable:$true] %s1315_s13 }
 0x167   : > { %939 = vmatpush.bf16.msrb.mxu3 %v1473_v22  ;;  %912 = vmatpush.bf16.msra.mxu1 %v1461_v26  ;;  %v799_v22 = vperm.slane %v796_v14, 1 }
 0x168   : > { %v711_v41 = vmax.f32 %v2419_v47, %v710_v34 }
 0x16a   : > { %v712_v33 = vrot.slane %v711_v41, 2 }
 0x16b   : > { %940 = vmatpush.bf16.msrb.mxu3 %v1465_v28  ;;  %1161 = vmatpush.bf16.msrb.mxu1 %v1687_v29  ;;  %v1713_v29 = vld [vmem:[#allocation11 + $0x28] sm:$0xff] }
 0x16c   : > { %v713_v4 = vmax.f32 %v711_v41, %v712_v33 }
 0x16e   : > { %1850 = vrot.lane.b32.xlu2 %v1849_v2, %s2135_s7  ;;  %v714_v51 = vrot.slane %v713_v4, 1  ;;  %s2054_s7 = sshra.s32 %s1316_s13, 4  ;;  %s2055_s7 = int_to_ptr.hbm [resolvable:$true] %s2054_s7 }
 0x16f   : > { %1162 = vmatpush.bf16.msrb.mxu1 %v1686_v31  ;;  %1209 = vmatpush.bf16.msra.mxu3 %v1707_v57  ;;  %v1709_v57 = vld [vmem:[#allocation11 + $0x8] sm:$0xff]  ;;  %s2056_s16 = scalar_lea.hbm %s2055_s7, 1  ;;  %p2061_p8 = scmp.lt.s32.totalorder %s2055_s7, %s2507_s12 }
 0x170   : > { %v715_v47 = vmax.f32 %v713_v4, %v714_v51  ;;  %p2057_p1 = scmp.ne.s32.totalorder %s2055_s7, %s2056_s16  ;;  %p2062_p7 = scmp.lt.s32.totalorder %s2060_s17, %s2056_s16 }
 0x172   : > { %v979_v1 = vpack.c.bf16 %v715_v47, %v715_v47  ;;  %p2058_p5 = pnand %p2057_p1, %p2287_p13  ;;  %p2063_p9 = por %p2062_p7, %p2061_p8 }
 0x173   : > { %1210 = vmatpush.bf16.msra.mxu3 %v1706_v60 }
 0x174   : > { %p2059_p12 = pneg %p2058_p5 }
 0x176   : > { %p2064_p10 = pnand %p2063_p9, %p2059_p12 }
 0x177   : > { %1211 = vmatpush.bf16.msra.mxu3 %v1705_v0  ;;  %v1219_v0 = vld [vmem:[%s2504_s9] sm:$0x1] }
 0x17b   : > { %1212 = vmatpush.bf16.msra.mxu3 %v1704_v6 }
 0x1c0   : > { %v1846_v30 = vpop.permute.xlu2 %1845 }
 0x1c1   : > { %v1848_v35 = vunpack.i.h.bf16 %v1846_v30  ;;  %v1847_v36 = vunpack.i.l.bf16 %v1846_v30 }
 0x1c3   : > { %v766_v42 = vsel %vm706_vm14, %v720_v39, %v1847_v36  ;;  %v767_v43 = vsel %vm706_vm14, %v2413_v46, %v1848_v35  ;;  %v1694_v46 = vld [vmem:[#allocation10 + $0x30] sm:$0xff] }
 0x1c4   : > { %1115 = vmatpush.bf16.msra.mxu2 %v1694_v46 }
 0x1c8   : > { %v1851_v32 = vpop.permute.xlu2 %1850  ;;  %1116 = vmatpush.bf16.msra.mxu2 %v1693_v54  ;;  %v1711_v54 = vld [vmem:[#allocation11 + $0x18] sm:$0xff] }
 0x1c9   : > { %v1853_v37 = vunpack.i.h.bf16 %v1851_v32  ;;  %v1852_v38 = vunpack.i.l.bf16 %v1851_v32 }
 0x1cb   : > { %v769_v7 = vsel %vm768_vm15, %v766_v42, %v1852_v38  ;;  %v770_v2 = vsel %vm768_vm15, %v767_v43, %v1853_v37  ;;  %v1712_v37 = vld [vmem:[#allocation11 + $0x20] sm:$0xff] }
 0x1cc   : > { %1117 = vmatpush.bf16.msra.mxu2 %v1692_v56  ;;  %v1710_v56 = vld [vmem:[#allocation11 + $0x10] sm:$0xff] }
 0x1d0   : > { %1118 = vmatpush.bf16.msra.mxu2 %v1691_v59  ;;  %v1708_v59 = vld [vmem:[#allocation11] sm:$0xff] }
 0x1d4   : > { %1119 = vmatpush.bf16.msra.mxu2 %v1690_v63 }
 0x1d8   : > { %v1856_v40 = vpop.permute.xlu0 %1855  ;;  %1120 = vmatpush.bf16.msra.mxu2 %v1689_v5 }
 0x1d9   : > { %v1858_v44 = vunpack.i.h.bf16 %v1856_v40  ;;  %v1857_v45 = vunpack.i.l.bf16 %v1856_v40 }
 0x1db   : > { %v772_v48 = vsel %vm771_vm0, %v769_v7, %v1857_v45  ;;  %v773_v49 = vsel %vm771_vm0, %v770_v2, %v1858_v44 }
 0x1dc   : > { %v774_v50 = vpack.c.bf16 %v773_v49, %v772_v48  ;;  %1121 = vmatpush.bf16.msra.mxu2 %v1688_v11  ;;  %v1239_v11 = vld [vmem:[%s2523_s25] sm:$0x1] }
 0x1de   : > { %913 = vmatmul.bf16.vlgmr.msra.gmra.mxu1 %v774_v50  ;;  %941 = vmatmul.bf16.vlgmr.msrb.gmra.mxu3 %v774_v50 }
 0x1e0   : > { %1288 = vmatpush.bf16.msrb.mxu2 %v1715_v19 }
 0x1e2   : > { %v956_v20 = vpop.f32.mrf.mxu0 }
 0x1e4   : > { %1289 = vmatpush.bf16.msrb.mxu2 %v1714_v23 }
 0x1e8   : > { %v928_v62 = vpop.f32.mrf.mxu3  ;;  %1290 = vmatpush.bf16.msrb.mxu2 %v1713_v29 }
 0x1ea   : > { %v958_v38 = vpop.f32.mrf.mxu0 }
 0x1ec   : > { %1291 = vmatpush.bf16.msrb.mxu2 %v1712_v37 }
 0x1ee   : > { %1612 = vmatmul.msk.bf16.vlgmr.msrb.gmra.mxu1 %vm706_vm14, %v979_v1  ;;  %1629 = vmatmul.msk.bf16.vlgmr.msra.gmra.mxu3 %vm768_vm15, %v1169_v10 }
 0x1f0   : > { %v930_v13 = vpop.f32.mrf.mxu3  ;;  %1292 = vmatpush.bf16.msrb.mxu2 %v1711_v54 }
 0x1f4   : > { %1293 = vmatpush.bf16.msrb.mxu2 %v1710_v56 }
 0x1f8   : > { %1294 = vmatpush.bf16.msrb.mxu2 %v1709_v57 }
 0x1fc   : > { %1295 = vmatpush.bf16.msrb.mxu2 %v1708_v59 }
 0x25b   : > { %v914_v15 = vpop.f32.mrf.mxu1 }
 0x25c   : > { %v915_v18 = vadd.f32 %v914_v15, %v798_v16 }
 0x25e   : > { %v929_v25 = vadd.f32 %v928_v62, %v915_v18 }
 0x260   : > { %v961_v30 = vmax.f32 %v929_v25, 0.0 }
 0x261   : > { %v942_v21 = vpop.f32.mrf.mxu3 }
 0x262   : > { %v943_v27 = vadd.f32 %v942_v21, %v799_v22 }
 0x263   : > { %v916_v24 = vpop.f32.mrf.mxu1 }
 0x264   : > { %v917_v26 = vadd.f32 %v916_v24, %v798_v16  ;;  %v957_v34 = vadd.f32 %v956_v20, %v943_v27 }
 0x266   : > { %v931_v28 = vadd.f32 %v930_v13, %v917_v26  ;;  %v962_v42 = vmax.f32 %v957_v34, 0.0 }
 0x268   : > { %v963_v31 = vmax.f32 %v931_v28, 0.0 }
 0x269   : > { %v944_v32 = vpop.f32.mrf.mxu3 }
 0x26a   : > { %v965_v35 = vmax.f32 %v961_v30, %v963_v31  ;;  %v945_v36 = vadd.f32 %v944_v32, %v799_v22 }
 0x26b   : > { %v1164_v39 = vpop.f32.mrf.mxu1 }
 0x26c   : > { %v966_v40 = vrot.slane %v965_v35, 4  ;;  %v959_v41 = vadd.f32 %v958_v38, %v945_v36 }
 0x26e   : > { %v964_v43 = vmax.f32 %v959_v41, 0.0  ;;  %v967_v44 = vmax.f32 %v965_v35, %v966_v40 }
 0x270   : > { %v972_v45 = vmax.f32 %v962_v42, %v964_v43  ;;  %v968_v7 = vrot.slane %v967_v44, 2 }
 0x271   : > { %v1214_v55 = vpop.f32.mrf.mxu3 }
 0x272   : > { %v973_v2 = vrot.slane %v972_v45, 4  ;;  %v969_v48 = vmax.f32 %v967_v44, %v968_v7 }
 0x273   : > { %v1166_v49 = vpop.f32.mrf.mxu1 }
 0x274   : > { %v974_v50 = vmax.f32 %v972_v45, %v973_v2  ;;  %v970_v33 = vrot.slane %v969_v48, 1 }
 0x276   : > { %v975_v4 = vrot.slane %v974_v50, 2  ;;  %v971_v51 = vmax.f32 %v969_v48, %v970_v33 }
 0x278   : > { %v976_v47 = vmax.f32 %v974_v50, %v975_v4  ;;  %v984_v1 = vpack.c.bf16 %v971_v51, %v971_v51 }
 0x279   : > { %v1216_v58 = vpop.f32.mrf.mxu3 }
 0x27a   : > { %1122 = vmatmul.bf16.vlgmr.msra.gmra.mxu2 %v984_v1  ;;  %v977_v52 = vrot.slane %v976_v47, 1 }
 0x27c   : > { %v978_v46 = vmax.f32 %v976_v47, %v977_v52 }
 0x27e   : > { %v985_v53 = vpack.c.bf16 %v978_v46, %v978_v46 }
 0x280   : > { %1135 = vmatmul.bf16.vlgmr.msra.gmra.mxu0 %v985_v53 }
 0x2fd   : > { %v1123_v60 = vpop.f32.mrf.mxu2  ;;  %v1136_v61 = vpop.f32.mrf.mxu0 }
 0x2fe   : > { %v1137_v62 = vadd.f32 %v1136_v61, %v1123_v60 }
 0x300   : > { %v1165_v63 = vadd.f32 %v1164_v39, %v1137_v62 }
 0x302   : > { %v1218_v3 = vadd.f32 %v1214_v55, %v1165_v63 }
 0x304   : > { %v1220_v5 = vadd.f32 %v1219_v0, %v1218_v3 }
 0x305   : > { %v1125_v6 = vpop.f32.mrf.mxu2  ;;  %v1138_v8 = vpop.f32.mrf.mxu0 }
 0x306   : > { %v1221_v9 = vmax.f32 %v1220_v5, 0.0 }
 0x308   : > { %v1222_v10 = vpack.c.bf16 %v1221_v9, %v1221_v9 }
 0x30a   : > { %1296 = vmatmul.bf16.vlgmr.msrb.gmra.mxu2 %v1222_v10 }
 0x38d   : > { %v1297_v12 = vpop.f32.mrf.mxu2 }
 0x38e   : > { %v1298_v13 = vadd.f32 %v1297_v12, %v1239_v11 }
 0x390   : > { %1301 = vst [vmem:[%s521_s26] sm:$0x1] %v1298_v13 }
 0x391   : > { %2067 = shalt.err (!%p2064_p10)
}
 0x392   : > { %1738 = dma.vmem_to_hbm [thread:$0]  (%p2287_p13), %s1314_s11, 16, %s1316_s13, %s1303_s4  }
 0x395   : > { %v1299_v14 = vpop.f32.mrf.mxu2 }
 0x396 PF: > { %s1327_s30 = sand.u32 1, %s2106_s21   ;;  %p2524_p11 = scmp.ge.s32.totalorder %s2118_s24, 2 }
 0x397   : > { %s1328_s20 = scalar_lea.sflag [#allocation4], %s1327_s30 }
 0x398   : > { %p1761_p0 = pnand %p2524_p11, %p2292_p4 }
 0x39a   : > { %p1762_p2 = pneg %p1761_p0 }
 0x39c   : > { %2101 = dma.done.wait (%p1762_p2), %s1328_s20, 16  }
 0x39d   : > { %2103 = vsyncadd (%p1762_p2), %s1328_s20, 4294967280  ;;  %p28_p6 = scmp.ge.s32.totalorder %s2267_s15, 4   ;;  %s2525_s21 = smov %s2110_s22 }
 0x39e   : > { %s2526_s22 = smov %s2114_s23  ;;  %s2527_s23 = smov %s2279_s18 }
 0x39f   : > { %s2528_s24 = smov %s2267_s15  ;;  %30 = sbr.rel (!%p28_p6) target bundleno = 14 (0xe), region = 136 }
 0x3a4   :  { %1333 = vsyncpa [#allocation3], 1 }
 0x3a5   :  { %1335 = vsyncpa [#allocation3 + $0x1], 1 }
 0x3a6   :  { %1336 = vsyncpa [#allocation6], 1 }
 0x3a7   :  { %1337 = vsyncpa [#allocation9], 1 }
 0x3a8   :  { %1338 = vsyncpa [#allocation12], 1 }
 0x3a9   :  { %1339 = vsyncpa [#allocation4], 1 }
 0x3aa   :  { %1341 = vsyncpa [#allocation4 + $0x1], 1 }

</bundles_post_ra>
